<compile_context>
chip_gen: v5e
topology: v5e:2x2
jax: 0.10.0
libtpu: 0.0.40
codegen_flags: <defaults>
</compile_context>

<pallas_src>
import functools

import jax
import jax.numpy as jnp
from jax.experimental import pallas as pl
from jax.experimental.pallas import tpu as pltpu


def _round_up(x, m):
    return ((x + m - 1) // m) * m


def _smooth_l1(d):
    # nn.SmoothL1Loss with default beta=1.0, reduction='none'
    a = jnp.abs(d)
    return jnp.where(a < 1.0, 0.5 * d * d, a - 0.5)


def _make_kernel(inv_n):
    """inv_n (1/true_batch_size) is a static Python float baked into the kernel."""

    def kernel(params_ref, packed_ref, out_ref, acc_t_ref, acc_r_ref):
        pid = pl.program_id(0)

        @pl.when(pid == 0)
        def _init():
            acc_t_ref[...] = jnp.zeros_like(acc_t_ref)
            acc_r_ref[...] = jnp.zeros_like(acc_r_ref)

        # ---- SmoothL1 on translation: rows 0:3 = transl_err, rows 3:6 = target_transl.
        # Every slice is a dense (tile_sub, 128) slab.
        t_sum = (_smooth_l1(packed_ref[0] - packed_ref[3])
                 + _smooth_l1(packed_ref[1] - packed_ref[4])
                 + _smooth_l1(packed_ref[2] - packed_ref[5]))

        # ---- quaternion distance: t = quatmult(q = rot_err, quatinv(r = target_rot))
        q0 = packed_ref[6]
        q1 = packed_ref[7]
        q2 = packed_ref[8]
        q3 = packed_ref[9]
        r0 = packed_ref[10]
        r1 = -packed_ref[11]
        r2 = -packed_ref[12]
        r3 = -packed_ref[13]
        t0 = r0 * q0 - r1 * q1 - r2 * q2 - r3 * q3
        t1 = r0 * q1 + r1 * q0 - r2 * q3 + r3 * q2
        t2 = r0 * q2 + r1 * q3 + r2 * q0 - r3 * q1
        t3 = r0 * q3 - r1 * q2 + r2 * q1 + r3 * q0
        vec_norm = jnp.sqrt(t1 * t1 + t2 * t2 + t3 * t3)
        dist = 2.0 * jnp.arctan2(vec_norm, jnp.abs(t0))

        # ---- elementwise accumulation (padding samples contribute exactly 0);
        # the expensive cross-lane reduce is deferred to finalize.
        acc_t_ref[...] += t_sum
        acc_r_ref[...] += dist

        # ---- finalize: reduce, mean over true N, homoscedastic-uncertainty weighting
        @pl.when(pid == pl.num_programs(0) - 1)
        def _finalize():
            ones = jnp.ones((1, 1), jnp.float32)
            sx = ones * params_ref[0]
            sq = ones * params_ref[1]
            loss_t = jnp.sum(acc_t_ref[...], axis=(0, 1), keepdims=True) * inv_n
            loss_r = jnp.sum(acc_r_ref[...], axis=(0, 1), keepdims=True) * inv_n
            out_ref[...] = jnp.exp(-sx) * loss_t + sx + jnp.exp(-sq) * loss_r + sq

    return kernel


@functools.partial(jax.jit, static_argnames=("max_tile_n",))
def geometric_loss(target_transl, target_rot, transl_err, rot_err, sx, sq,
                   *, max_tile_n=65536):
    f32 = jnp.float32
    n = target_transl.shape[0]

    # ---- tiling: 128 samples per lane row; tile_sub rows of 128 per grid step.
    n_sub = pl.cdiv(n, 128)
    max_tile_sub = max(1, max_tile_n // 128)
    if n_sub <= max_tile_sub:
        tile_sub = n_sub            # single tile; block dim == full array dim is legal
        n_sub_pad = n_sub
    else:
        tile_sub = max(8, (max_tile_sub // 8) * 8)   # keep (8,128) divisibility
        n_sub_pad = _round_up(n_sub, tile_sub)
    num_tiles = n_sub_pad // tile_sub
    n_pad = n_sub_pad * 128

    # ---- pack everything into one dense [14, n_sub_pad, 128] f32 array:
    #   rows 0:3   transl_err^T      rows 3:6   target_transl^T
    #   rows 6:10  rot_err^T         rows 10:14 target_rot^T
    base = jnp.concatenate(
        [transl_err.astype(f32).T,
         target_transl.astype(f32).T,
         rot_err.astype(f32).T,
         target_rot.astype(f32).T], axis=0)                       # (14, n)
    if n_pad > n:
        # Identity-quaternion / zero-translation padding columns: quatmult gives
        # t=(1,0,0,0) -> atan2(0,1)=0 and SmoothL1(0)=0, so they contribute nothing.
        pad_col = jnp.zeros((14, 1), f32).at[6, 0].set(1.0).at[10, 0].set(1.0)
        base = jnp.concatenate(
            [base, jnp.broadcast_to(pad_col, (14, n_pad - n))], axis=1)
    packed = base.reshape(14, n_sub_pad, 128)

    # sx, sq live in SMEM via scalar prefetch (no padded VMEM tiles / extra DMAs).
    params = jnp.stack([jnp.asarray(sx, f32).reshape(()),
                        jnp.asarray(sq, f32).reshape(())])

    kernel = _make_kernel(1.0 / float(n))

    out = pl.pallas_call(
        kernel,
        out_shape=jax.ShapeDtypeStruct((1, 1), f32),
        grid_spec=pltpu.PrefetchScalarGridSpec(
            num_scalar_prefetch=1,
            grid=(num_tiles,),
            in_specs=[pl.BlockSpec((14, tile_sub, 128),
                                   lambda i, params: (0, i, 0))],
            out_specs=pl.BlockSpec((1, 1), lambda i, params: (0, 0)),
            scratch_shapes=[pltpu.VMEM((tile_sub, 128), f32),   # running transl sums
                            pltpu.VMEM((tile_sub, 128), f32)],  # running rot sums
        ),
        compiler_params=pltpu.CompilerParams(
            dimension_semantics=("arbitrary",)),
    )(params, packed)
    return out[0, 0]


def _reference(target_transl, target_rot, transl_err, rot_err, sx, sq):
    # pure-JAX reference mirroring the PyTorch forward
    diff = transl_err - target_transl
    adiff = jnp.abs(diff)
    sl1 = jnp.where(adiff < 1.0, 0.5 * diff * diff, adiff - 0.5)
    loss_transl = jnp.mean(jnp.sum(sl1, axis=1))

    q, r = rot_err, target_rot
    r = r * jnp.array([1.0, -1.0, -1.0, -1.0], jnp.float32)  # quatinv
    t0 = r[:, 0] * q[:, 0] - r[:, 1] * q[:, 1] - r[:, 2] * q[:, 2] - r[:, 3] * q[:, 3]
    t1 = r[:, 0] * q[:, 1] + r[:, 1] * q[:, 0] - r[:, 2] * q[:, 3] + r[:, 3] * q[:, 2]
    t2 = r[:, 0] * q[:, 2] + r[:, 1] * q[:, 3] + r[:, 2] * q[:, 0] - r[:, 3] * q[:, 1]
    t3 = r[:, 0] * q[:, 3] - r[:, 1] * q[:, 2] + r[:, 2] * q[:, 1] + r[:, 3] * q[:, 0]
    dist = 2.0 * jnp.arctan2(jnp.sqrt(t1 * t1 + t2 * t2 + t3 * t3), jnp.abs(t0))
    loss_rot = jnp.mean(dist)

    return jnp.exp(-sx) * loss_transl + sx + jnp.exp(-sq) * loss_rot + sq


def _make_inputs(key, n):
    k1, k2, k3, k4 = jax.random.split(key, 4)
    target_transl = jax.random.normal(k1, (n, 3), jnp.float32)
    transl_err = jax.random.normal(k3, (n, 3), jnp.float32)
    target_rot = jax.random.normal(k2, (n, 4), jnp.float32)
    target_rot = target_rot / jnp.linalg.norm(target_rot, axis=1, keepdims=True)
    rot_err = jax.random.normal(k4, (n, 4), jnp.float32)
    rot_err = rot_err / jnp.linalg.norm(rot_err, axis=1, keepdims=True)
    return target_transl, target_rot, transl_err, rot_err


if __name__ == "__main__":
    key = jax.random.PRNGKey(0)

    # deterministic parameter init matching the module's __init__
    sx = jnp.float32(0.0)
    sq = jnp.float32(-3.0)

    # --- case 1: small batch (single tile, tile_sub == full dim == 1, lane padding)
    ka, kb, kc = jax.random.split(key, 3)
    tt, tr, te, re = _make_inputs(ka, 8)
    out = jax.block_until_ready(geometric_loss(tt, tr, te, re, sx, sq))
    ref = _reference(tt, tr, te, re, sx, sq)
    assert jnp.allclose(out, ref, atol=1e-4, rtol=1e-4), (out, ref)

    # --- case 2: single-tile, multi-sublane-row path (n_sub=2, no grid loop)
    tt2, tr2, te2, re2 = _make_inputs(kb, 200)
    out2 = jax.block_until_ready(geometric_loss(tt2, tr2, te2, re2, sx, sq))
    ref2 = _reference(tt2, tr2, te2, re2, sx, sq)
    assert jnp.allclose(out2, ref2, atol=1e-4, rtol=1e-4), (out2, ref2)

    # --- case 3: multi-tile accumulator + padding path (n=2000 -> n_sub=16, 2 tiles)
    tt3, tr3, te3, re3 = _make_inputs(kc, 2000)
    out3 = jax.block_until_ready(
        geometric_loss(tt3, tr3, te3, re3, sx, sq, max_tile_n=1024))
    ref3 = _reference(tt3, tr3, te3, re3, sx, sq)
    assert jnp.allclose(out3, ref3, atol=1e-4, rtol=1e-4), (out3, ref3)

    print("KERNEL_OK")
</pallas_src>

<mosaic_0001>
module attributes {stable_mosaic.version = 11 : i64} {
  func.func @kernel(%arg0: i32, %arg1: memref<2xf32, #tpu.memory_space<smem>>, %arg2: memref<14x1x128xf32, #tpu.memory_space<vmem>>, %arg3: memref<1x1xf32, #tpu.memory_space<vmem>>, %arg4: memref<1x128xf32, #tpu.memory_space<vmem>>, %arg5: memref<1x128xf32, #tpu.memory_space<vmem>>) attributes {dimension_semantics = [#tpu.dimension_semantics<arbitrary>], iteration_bounds = array<i64: 1>, scalar_prefetch = 1 : i64, scratch_operands = 2 : i64, tpu.core_type = #tpu.core_type<tc>, window_params = [{transform_indices = @transform_0, window_bounds = array<i64: 14, 1, 128>}, {pipeline_mode = #tpu.pipeline_mode<synchronous>, transform_indices = @transform_1, window_bounds = array<i64: 1, 1>}]} {
    %c0_i32 = arith.constant 0 : i32
    %0 = arith.cmpi eq, %arg0, %c0_i32 : i32
    %1 = arith.extui %0 : i1 to i32
    %c0_i32_0 = arith.constant 0 : i32
    %2 = arith.cmpi ne, %1, %c0_i32_0 : i32
    scf.if %2 {
      %cst_51 = arith.constant 0.000000e+00 : f32
      %116 = vector.broadcast %cst_51 : f32 to vector<1x128xf32>
      %c0_52 = arith.constant 0 : index
      %c0_53 = arith.constant 0 : index
      %117 = vector.load %arg4[%c0_52, %c0_53] : memref<1x128xf32, #tpu.memory_space<vmem>>, vector<1x128xf32>
      tpu.vector_store %arg4[%c0_52, %c0_53], %116 {strides = array<i32>} : memref<1x128xf32, #tpu.memory_space<vmem>>, vector<1x128xf32>,
      %cst_54 = arith.constant 0.000000e+00 : f32
      %118 = vector.broadcast %cst_54 : f32 to vector<1x128xf32>
      %c0_55 = arith.constant 0 : index
      %c0_56 = arith.constant 0 : index
      %119 = vector.load %arg5[%c0_55, %c0_56] : memref<1x128xf32, #tpu.memory_space<vmem>>, vector<1x128xf32>
      tpu.vector_store %arg5[%c0_55, %c0_56], %118 {strides = array<i32>} : memref<1x128xf32, #tpu.memory_space<vmem>>, vector<1x128xf32>,
    } else {
    }
    %c0 = arith.constant 0 : index
    %c0_1 = arith.constant 0 : index
    %c0_2 = arith.constant 0 : index
    %3 = vector.load %arg2[%c0, %c0_1, %c0_2] : memref<14x1x128xf32, #tpu.memory_space<vmem>>, vector<1x1x128xf32>
    %4 = vector.shape_cast %3 : vector<1x1x128xf32> to vector<1x128xf32>
    %c3 = arith.constant 3 : index
    %c0_3 = arith.constant 0 : index
    %c0_4 = arith.constant 0 : index
    %5 = vector.load %arg2[%c3, %c0_3, %c0_4] : memref<14x1x128xf32, #tpu.memory_space<vmem>>, vector<1x1x128xf32>
    %6 = vector.shape_cast %5 : vector<1x1x128xf32> to vector<1x128xf32>
    %7 = arith.subf %4, %6 : vector<1x128xf32>
    %8 = math.absf %7 : vector<1x128xf32>
    %cst = arith.constant 1.000000e+00 : f32
    %9 = vector.broadcast %cst : f32 to vector<1x128xf32>
    %10 = arith.cmpf olt, %8, %9 : vector<1x128xf32>
    %cst_5 = arith.constant 5.000000e-01 : f32
    %11 = vector.broadcast %cst_5 : f32 to vector<1x128xf32>
    %12 = arith.mulf %11, %7 : vector<1x128xf32>
    %13 = arith.mulf %12, %7 : vector<1x128xf32>
    %cst_6 = arith.constant 5.000000e-01 : f32
    %14 = vector.broadcast %cst_6 : f32 to vector<1x128xf32>
    %15 = arith.subf %8, %14 : vector<1x128xf32>
    %16 = arith.select %10, %13, %15 : vector<1x128xi1>, vector<1x128xf32>
    %c1 = arith.constant 1 : index
    %c0_7 = arith.constant 0 : index
    %c0_8 = arith.constant 0 : index
    %17 = vector.load %arg2[%c1, %c0_7, %c0_8] : memref<14x1x128xf32, #tpu.memory_space<vmem>>, vector<1x1x128xf32>
    %18 = vector.shape_cast %17 : vector<1x1x128xf32> to vector<1x128xf32>
    %c4 = arith.constant 4 : index
    %c0_9 = arith.constant 0 : index
    %c0_10 = arith.constant 0 : index
    %19 = vector.load %arg2[%c4, %c0_9, %c0_10] : memref<14x1x128xf32, #tpu.memory_space<vmem>>, vector<1x1x128xf32>
    %20 = vector.shape_cast %19 : vector<1x1x128xf32> to vector<1x128xf32>
    %21 = arith.subf %18, %20 : vector<1x128xf32>
    %22 = math.absf %21 : vector<1x128xf32>
    %cst_11 = arith.constant 1.000000e+00 : f32
    %23 = vector.broadcast %cst_11 : f32 to vector<1x128xf32>
    %24 = arith.cmpf olt, %22, %23 : vector<1x128xf32>
    %cst_12 = arith.constant 5.000000e-01 : f32
    %25 = vector.broadcast %cst_12 : f32 to vector<1x128xf32>
    %26 = arith.mulf %25, %21 : vector<1x128xf32>
    %27 = arith.mulf %26, %21 : vector<1x128xf32>
    %cst_13 = arith.constant 5.000000e-01 : f32
    %28 = vector.broadcast %cst_13 : f32 to vector<1x128xf32>
    %29 = arith.subf %22, %28 : vector<1x128xf32>
    %30 = arith.select %24, %27, %29 : vector<1x128xi1>, vector<1x128xf32>
    %31 = arith.addf %16, %30 : vector<1x128xf32>
    %c2 = arith.constant 2 : index
    %c0_14 = arith.constant 0 : index
    %c0_15 = arith.constant 0 : index
    %32 = vector.load %arg2[%c2, %c0_14, %c0_15] : memref<14x1x128xf32, #tpu.memory_space<vmem>>, vector<1x1x128xf32>
    %33 = vector.shape_cast %32 : vector<1x1x128xf32> to vector<1x128xf32>
    %c5 = arith.constant 5 : index
    %c0_16 = arith.constant 0 : index
    %c0_17 = arith.constant 0 : index
    %34 = vector.load %arg2[%c5, %c0_16, %c0_17] : memref<14x1x128xf32, #tpu.memory_space<vmem>>, vector<1x1x128xf32>
    %35 = vector.shape_cast %34 : vector<1x1x128xf32> to vector<1x128xf32>
    %36 = arith.subf %33, %35 : vector<1x128xf32>
    %37 = math.absf %36 : vector<1x128xf32>
    %cst_18 = arith.constant 1.000000e+00 : f32
    %38 = vector.broadcast %cst_18 : f32 to vector<1x128xf32>
    %39 = arith.cmpf olt, %37, %38 : vector<1x128xf32>
    %cst_19 = arith.constant 5.000000e-01 : f32
    %40 = vector.broadcast %cst_19 : f32 to vector<1x128xf32>
    %41 = arith.mulf %40, %36 : vector<1x128xf32>
    %42 = arith.mulf %41, %36 : vector<1x128xf32>
    %cst_20 = arith.constant 5.000000e-01 : f32
    %43 = vector.broadcast %cst_20 : f32 to vector<1x128xf32>
    %44 = arith.subf %37, %43 : vector<1x128xf32>
    %45 = arith.select %39, %42, %44 : vector<1x128xi1>, vector<1x128xf32>
    %46 = arith.addf %31, %45 : vector<1x128xf32>
    %c6 = arith.constant 6 : index
    %c0_21 = arith.constant 0 : index
    %c0_22 = arith.constant 0 : index
    %47 = vector.load %arg2[%c6, %c0_21, %c0_22] : memref<14x1x128xf32, #tpu.memory_space<vmem>>, vector<1x1x128xf32>
    %48 = vector.shape_cast %47 : vector<1x1x128xf32> to vector<1x128xf32>
    %c7 = arith.constant 7 : index
    %c0_23 = arith.constant 0 : index
    %c0_24 = arith.constant 0 : index
    %49 = vector.load %arg2[%c7, %c0_23, %c0_24] : memref<14x1x128xf32, #tpu.memory_space<vmem>>, vector<1x1x128xf32>
    %50 = vector.shape_cast %49 : vector<1x1x128xf32> to vector<1x128xf32>
    %c8 = arith.constant 8 : index
    %c0_25 = arith.constant 0 : index
    %c0_26 = arith.constant 0 : index
    %51 = vector.load %arg2[%c8, %c0_25, %c0_26] : memref<14x1x128xf32, #tpu.memory_space<vmem>>, vector<1x1x128xf32>
    %52 = vector.shape_cast %51 : vector<1x1x128xf32> to vector<1x128xf32>
    %c9 = arith.constant 9 : index
    %c0_27 = arith.constant 0 : index
    %c0_28 = arith.constant 0 : index
    %53 = vector.load %arg2[%c9, %c0_27, %c0_28] : memref<14x1x128xf32, #tpu.memory_space<vmem>>, vector<1x1x128xf32>
    %54 = vector.shape_cast %53 : vector<1x1x128xf32> to vector<1x128xf32>
    %c10 = arith.constant 10 : index
    %c0_29 = arith.constant 0 : index
    %c0_30 = arith.constant 0 : index
    %55 = vector.load %arg2[%c10, %c0_29, %c0_30] : memref<14x1x128xf32, #tpu.memory_space<vmem>>, vector<1x1x128xf32>
    %56 = vector.shape_cast %55 : vector<1x1x128xf32> to vector<1x128xf32>
    %c11 = arith.constant 11 : index
    %c0_31 = arith.constant 0 : index
    %c0_32 = arith.constant 0 : index
    %57 = vector.load %arg2[%c11, %c0_31, %c0_32] : memref<14x1x128xf32, #tpu.memory_space<vmem>>, vector<1x1x128xf32>
    %58 = vector.shape_cast %57 : vector<1x1x128xf32> to vector<1x128xf32>
    %cst_33 = arith.constant 0.000000e+00 : f32
    %59 = vector.broadcast %cst_33 : f32 to vector<1x128xf32>
    %60 = arith.subf %59, %58 : vector<1x128xf32>
    %c12 = arith.constant 12 : index
    %c0_34 = arith.constant 0 : index
    %c0_35 = arith.constant 0 : index
    %61 = vector.load %arg2[%c12, %c0_34, %c0_35] : memref<14x1x128xf32, #tpu.memory_space<vmem>>, vector<1x1x128xf32>
    %62 = vector.shape_cast %61 : vector<1x1x128xf32> to vector<1x128xf32>
    %cst_36 = arith.constant 0.000000e+00 : f32
    %63 = vector.broadcast %cst_36 : f32 to vector<1x128xf32>
    %64 = arith.subf %63, %62 : vector<1x128xf32>
    %c13 = arith.constant 13 : index
    %c0_37 = arith.constant 0 : index
    %c0_38 = arith.constant 0 : index
    %65 = vector.load %arg2[%c13, %c0_37, %c0_38] : memref<14x1x128xf32, #tpu.memory_space<vmem>>, vector<1x1x128xf32>
    %66 = vector.shape_cast %65 : vector<1x1x128xf32> to vector<1x128xf32>
    %cst_39 = arith.constant 0.000000e+00 : f32
    %67 = vector.broadcast %cst_39 : f32 to vector<1x128xf32>
    %68 = arith.subf %67, %66 : vector<1x128xf32>
    %69 = arith.mulf %56, %48 : vector<1x128xf32>
    %70 = arith.mulf %60, %50 : vector<1x128xf32>
    %71 = arith.subf %69, %70 : vector<1x128xf32>
    %72 = arith.mulf %64, %52 : vector<1x128xf32>
    %73 = arith.subf %71, %72 : vector<1x128xf32>
    %74 = arith.mulf %68, %54 : vector<1x128xf32>
    %75 = arith.subf %73, %74 : vector<1x128xf32>
    %76 = arith.mulf %56, %50 : vector<1x128xf32>
    %77 = arith.mulf %60, %48 : vector<1x128xf32>
    %78 = arith.addf %76, %77 : vector<1x128xf32>
    %79 = arith.mulf %64, %54 : vector<1x128xf32>
    %80 = arith.subf %78, %79 : vector<1x128xf32>
    %81 = arith.mulf %68, %52 : vector<1x128xf32>
    %82 = arith.addf %80, %81 : vector<1x128xf32>
    %83 = arith.mulf %56, %52 : vector<1x128xf32>
    %84 = arith.mulf %60, %54 : vector<1x128xf32>
    %85 = arith.addf %83, %84 : vector<1x128xf32>
    %86 = arith.mulf %64, %48 : vector<1x128xf32>
    %87 = arith.addf %85, %86 : vector<1x128xf32>
    %88 = arith.mulf %68, %50 : vector<1x128xf32>
    %89 = arith.subf %87, %88 : vector<1x128xf32>
    %90 = arith.mulf %56, %54 : vector<1x128xf32>
    %91 = arith.mulf %60, %52 : vector<1x128xf32>
    %92 = arith.subf %90, %91 : vector<1x128xf32>
    %93 = arith.mulf %64, %50 : vector<1x128xf32>
    %94 = arith.addf %92, %93 : vector<1x128xf32>
    %95 = arith.mulf %68, %48 : vector<1x128xf32>
    %96 = arith.addf %94, %95 : vector<1x128xf32>
    %97 = arith.mulf %82, %82 : vector<1x128xf32>
    %98 = arith.mulf %89, %89 : vector<1x128xf32>
    %99 = arith.addf %97, %98 : vector<1x128xf32>
    %100 = arith.mulf %96, %96 : vector<1x128xf32>
    %101 = arith.addf %99, %100 : vector<1x128xf32>
    %102 = math.sqrt %101 : vector<1x128xf32>
    %103 = math.absf %75 : vector<1x128xf32>
    %104 = math.atan2 %102, %103 : vector<1x128xf32>
    %cst_40 = arith.constant 2.000000e+00 : f32
    %105 = vector.broadcast %cst_40 : f32 to vector<1x128xf32>
    %106 = arith.mulf %105, %104 : vector<1x128xf32>
    %c0_41 = arith.constant 0 : index
    %c0_42 = arith.constant 0 : index
    %107 = vector.load %arg4[%c0_41, %c0_42] : memref<1x128xf32, #tpu.memory_space<vmem>>, vector<1x128xf32>
    %108 = arith.addf %107, %46 : vector<1x128xf32>
    %c0_43 = arith.constant 0 : index
    %c0_44 = arith.constant 0 : index
    %109 = vector.load %arg4[%c0_43, %c0_44] : memref<1x128xf32, #tpu.memory_space<vmem>>, vector<1x128xf32>
    tpu.vector_store %arg4[%c0_43, %c0_44], %108 {strides = array<i32>} : memref<1x128xf32, #tpu.memory_space<vmem>>, vector<1x128xf32>,
    %c0_45 = arith.constant 0 : index
    %c0_46 = arith.constant 0 : index
    %110 = vector.load %arg5[%c0_45, %c0_46] : memref<1x128xf32, #tpu.memory_space<vmem>>, vector<1x128xf32>
    %111 = arith.addf %110, %106 : vector<1x128xf32>
    %c0_47 = arith.constant 0 : index
    %c0_48 = arith.constant 0 : index
    %112 = vector.load %arg5[%c0_47, %c0_48] : memref<1x128xf32, #tpu.memory_space<vmem>>, vector<1x128xf32>
    tpu.vector_store %arg5[%c0_47, %c0_48], %111 {strides = array<i32>} : memref<1x128xf32, #tpu.memory_space<vmem>>, vector<1x128xf32>,
    %c0_i32_49 = arith.constant 0 : i32
    %113 = arith.cmpi eq, %arg0, %c0_i32_49 : i32
    %114 = arith.extui %113 : i1 to i32
    %c0_i32_50 = arith.constant 0 : i32
    %115 = arith.cmpi ne, %114, %c0_i32_50 : i32
    scf.if %115 {
      %cst_51 = arith.constant 1.000000e+00 : f32
      %116 = vector.broadcast %cst_51 : f32 to vector<1x1xf32>
      %c0_52 = arith.constant 0 : index
      %117 = memref.load %arg1[%c0_52] : memref<2xf32, #tpu.memory_space<smem>>
      %118 = vector.broadcast %117 : f32 to vector<1x1xf32>
      %119 = arith.mulf %116, %118 : vector<1x1xf32>
      %c1_53 = arith.constant 1 : index
      %120 = memref.load %arg1[%c1_53] : memref<2xf32, #tpu.memory_space<smem>>
      %121 = vector.broadcast %120 : f32 to vector<1x1xf32>
      %122 = arith.mulf %116, %121 : vector<1x1xf32>
      %c0_54 = arith.constant 0 : index
      %c0_55 = arith.constant 0 : index
      %123 = vector.load %arg4[%c0_54, %c0_55] : memref<1x128xf32, #tpu.memory_space<vmem>>, vector<1x128xf32>
      %124 = vector.shape_cast %123 : vector<1x128xf32> to vector<1x1x128xf32>
      %cst_56 = arith.constant dense<0.000000e+00> : vector<1xf32>
      %125 = vector.multi_reduction <add>, %124, %cst_56 [1, 2] : vector<1x1x128xf32> to vector<1xf32>
      %126 = vector.shape_cast %125 : vector<1xf32> to vector<1x1x1xf32>
      %127 = vector.extract %126[0, 0, 0] : f32 from vector<1x1x1xf32>
      %128 = vector.broadcast %127 : f32 to vector<1x1xf32>
      %cst_57 = arith.constant 1.250000e-01 : f32
      %129 = vector.broadcast %cst_57 : f32 to vector<1x1xf32>
      %130 = arith.mulf %128, %129 : vector<1x1xf32>
      %c0_58 = arith.constant 0 : index
      %c0_59 = arith.constant 0 : index
      %131 = vector.load %arg5[%c0_58, %c0_59] : memref<1x128xf32, #tpu.memory_space<vmem>>, vector<1x128xf32>
      %132 = vector.shape_cast %131 : vector<1x128xf32> to vector<1x1x128xf32>
      %cst_60 = arith.constant dense<0.000000e+00> : vector<1xf32>
      %133 = vector.multi_reduction <add>, %132, %cst_60 [1, 2] : vector<1x1x128xf32> to vector<1xf32>
      %134 = vector.shape_cast %133 : vector<1xf32> to vector<1x1x1xf32>
      %135 = vector.extract %134[0, 0, 0] : f32 from vector<1x1x1xf32>
      %136 = vector.broadcast %135 : f32 to vector<1x1xf32>
      %cst_61 = arith.constant 1.250000e-01 : f32
      %137 = vector.broadcast %cst_61 : f32 to vector<1x1xf32>
      %138 = arith.mulf %136, %137 : vector<1x1xf32>
      %cst_62 = arith.constant 0.000000e+00 : f32
      %139 = vector.broadcast %cst_62 : f32 to vector<1x1xf32>
      %140 = arith.subf %139, %119 : vector<1x1xf32>
      %141 = math.exp %140 : vector<1x1xf32>
      %142 = arith.mulf %141, %130 : vector<1x1xf32>
      %143 = arith.addf %142, %119 : vector<1x1xf32>
      %cst_63 = arith.constant 0.000000e+00 : f32
      %144 = vector.broadcast %cst_63 : f32 to vector<1x1xf32>
      %145 = arith.subf %144, %122 : vector<1x1xf32>
      %146 = math.exp %145 : vector<1x1xf32>
      %147 = arith.mulf %146, %138 : vector<1x1xf32>
      %148 = arith.addf %143, %147 : vector<1x1xf32>
      %149 = arith.addf %148, %122 : vector<1x1xf32>
      %c0_64 = arith.constant 0 : index
      %c0_65 = arith.constant 0 : index
      %150 = vector.load %arg3[%c0_64, %c0_65] : memref<1x1xf32, #tpu.memory_space<vmem>>, vector<1x1xf32>
      tpu.vector_store %arg3[%c0_64, %c0_65], %149 {strides = array<i32>} : memref<1x1xf32, #tpu.memory_space<vmem>>, vector<1x1xf32>,
    } else {
    }
    return
  }
  func.func @transform_0(%arg0: i32, %arg1: memref<2xf32, #tpu.memory_space<smem>>) -> (i32, i32, i32) {
    %c0_i32 = arith.constant 0 : i32
    %c0_i32_0 = arith.constant 0 : i32
    %c0_i32_1 = arith.constant 0 : i32
    return %c0_i32, %arg0, %c0_i32_0 : i32, i32, i32
  }
  func.func @transform_1(%arg0: i32, %arg1: memref<2xf32, #tpu.memory_space<smem>>) -> (i32, i32) {
    %c0_i32 = arith.constant 0 : i32
    %c0_i32_0 = arith.constant 0 : i32
    %c0_i32_1 = arith.constant 0 : i32
    return %c0_i32, %c0_i32_0 : i32, i32
  }
}

</mosaic_0001>

<bundles_post_ra>
// kernel: geometric_loss.1
= control target key start
LH: loop header
LB: loop body
LE: loop exit
PB: predicated region body
PF: predicated region fallthrough
CT: control target
= control target key end

     0   :  { %s324_s12 = smov [#allocation5]   ;;  %s411_s0 = inlined_call_operand.vmem [shape: f32[2], index: 0, kind: input, shape index: {}]   ;;  %s412_s1 = inlined_call_operand.vmem [shape: f32[14,1,128], index: 1, kind: input, shape index: {}]   ;;  %s413_s2 = inlined_call_operand.hbm [shape: f32[1,1], index: 2, kind: output, shape index: {}]  }
   0x1   :  { %s8_s11 = sshll.u32 %s411_s0, 4  ;;  %s9_s11 = int_to_ptr.vmem [resolvable:$true] %s8_s11 }
   0x2   :  { %11 = dma.vmem_to_smem %s9_s11, 16, %s324_s12, [#allocation4] }
   0x3   :  { %320 = dma.done.wait [#allocation4], 16 }
   0x4   :  { %321 = vsyncadd [#allocation4], 4294967280 }
   0x5   :  { %14 = sfence }
   0x6   :  { %v24_v0 = vld [vmem:[%s412_s1] sm:$0x1]  ;;  %v251_v1 = vld [vmem:[%s412_s1 + $0x3] sm:$0x1]  ;;  %v325_v2 = vmov 0.0  }
   0x7   :  { %22 = vst [vmem:[#allocation2] sm:$0x1] %v325_v2  ;;  %v27_v3 = vsub.f32 %v24_v0, %v251_v1  ;;  %v253_v4 = vld [vmem:[%s412_s1 + $0x1] sm:$0x1]  ;;  %v254_v5 = vld [vmem:[%s412_s1 + $0x4] sm:$0x1] }
   0x8   :  { %v38_v6 = vsub.f32 %v253_v4, %v254_v5  ;;  %v256_v7 = vld [vmem:[%s412_s1 + $0x2] sm:$0x1]  ;;  %v257_v8 = vld [vmem:[%s412_s1 + $0x5] sm:$0x1]  ;;  %23 = vst [vmem:[#allocation3] sm:$0x1] %v325_v2 }
   0x9   :  { %v28_v9 = vand.u32 2147483647, %v27_v3  ;;  %v30_v10 = vmul.f32 0.5, %v27_v3  ;;  %v50_v11 = vsub.f32 %v256_v7, %v257_v8  ;;  %v259_v18 = vld [vmem:[%s412_s1 + $0x6] sm:$0x1] }
   0xa   :  { %v39_v12 = vand.u32 2147483647, %v38_v6  ;;  %v41_v13 = vmul.f32 0.5, %v38_v6  ;;  %v260_v19 = vld [vmem:[%s412_s1 + $0x7] sm:$0x1] }
   0xb   :  { %vm364_vm0 = vcmp.lt.f32.partialorder %v28_v9, 1.0  ;;  %v31_v15 = vmul.f32 %v30_v10, %v27_v3  ;;  %v252_v16 = vadd.f32 -0.5, %v28_v9  ;;  %v51_v17 = vand.u32 2147483647, %v50_v11  ;;  %v261_v23 = vld [vmem:[%s412_s1 + $0x8] sm:$0x1] }
   0xc   :  { %vm40_vm1 = vcmp.lt.f32.partialorder %v39_v12, 1.0  ;;  %v42_v20 = vmul.f32 %v41_v13, %v38_v6  ;;  %v255_v21 = vadd.f32 -0.5, %v39_v12  ;;  %v53_v22 = vmul.f32 0.5, %v50_v11  ;;  %v263_v27 = vld [vmem:[%s412_s1 + $0xa] sm:$0x1] }
   0xd   :  { %v33_v24 = vsel %vm364_vm0, %v31_v15, %v252_v16  ;;  %vm379_vm2 = vcmp.lt.f32.partialorder %v51_v17, 1.0  ;;  %v258_v26 = vadd.f32 -0.5, %v51_v17  ;;  %v264_v28 = vld [vmem:[%s412_s1 + $0xb] sm:$0x1]  ;;  %v262_v31 = vld [vmem:[%s412_s1 + $0x9] sm:$0x1]  ;;  %v84_v37 = vmul.f32 %v263_v27, %v260_v19 }
   0xe   :  { %v44_v29 = vsel %vm40_vm1, %v42_v20, %v255_v21  ;;  %v54_v30 = vmul.f32 %v53_v22, %v50_v11  ;;  %v70_v32 = vsub.f32 0.0, %v264_v28  ;;  %v265_v33 = vld [vmem:[%s412_s1 + $0xc] sm:$0x1]  ;;  %v266_v36 = vld [vmem:[%s412_s1 + $0xd] sm:$0x1]  ;;  %v91_v38 = vmul.f32 %v263_v27, %v261_v23 }
   0xf   :  { %v45_v34 = vadd.f32 %v44_v29, %v33_v24  ;;  %v73_v35 = vsub.f32 0.0, %v265_v33 }
  0x10   :  { %15 = vsyncpa [#allocation7], 0  ;;  %v56_v39 = vsel %vm379_vm2, %v54_v30, %v258_v26  ;;  %v182_v40 = vld [vmem:[#allocation2] sm:$0x1]  ;;  %v76_v41 = vsub.f32 0.0, %v266_v36  ;;  %v85_v42 = vmul.f32 %v259_v18, %v70_v32  ;;  %v92_v45 = vmul.f32 %v262_v31, %v70_v32  ;;  %s191_s1 = sld [smem:[#allocation5]] }
  0x11   :  { %v57_v43 = vadd.f32 %v56_v39, %v45_v34  ;;  %v87_v44 = vmul.f32 %v262_v31, %v73_v35  ;;  %v94_v50 = vmul.f32 %v259_v18, %v73_v35  ;;  %v98_v53 = vmul.f32 %v263_v27, %v262_v31  ;;  %s267_s12 = sld [smem:[#allocation5 + $0x1]]  ;;  %s327_s15 = smov [#allocation6]  }
  0x12   :  { %v86_v46 = vadd.f32 %v85_v42, %v84_v37  ;;  %v89_v47 = vmul.f32 %v261_v23, %v76_v41  ;;  %v93_v49 = vadd.f32 %v92_v45, %v91_v38  ;;  %v96_v51 = vmul.f32 %v260_v19, %v76_v41  ;;  %s240_s16 = sshll.u32 %s327_s15, 4  ;;  %s242_s0 = sshll.u32 %s413_s2, 4  ;;  %s241_s16 = int_to_ptr.vmem [resolvable:$true] %s240_s16  ;;  %s243_s0 = int_to_ptr.hbm [resolvable:$true] %s242_s0 }
  0x13   :  { %v183_v48 = vadd.f32 %v182_v40, %v57_v43  ;;  %v99_v54 = vmul.f32 %v261_v23, %v70_v32  ;;  %v101_v56 = vmul.f32 %v260_v19, %v73_v35  ;;  %v103_v59 = vmul.f32 %v259_v18, %v76_v41 }
  0x14   :  { %v88_v52 = vsub.f32 %v86_v46, %v87_v44  ;;  %v95_v55 = vadd.f32 %v94_v50, %v93_v49  ;;  %vm196_vm3 = vcmask 1040384   ;;  %v77_v6 = vmul.f32 %v263_v27, %v259_v18 }
  0x15   :  { %184 = vst [vmem:[#allocation2] sm:$0x1] %v183_v48  ;;  %v100_v58 = vsub.f32 %v98_v53, %v99_v54  ;;  %v78_v7 = vmul.f32 %v260_v19, %v70_v32  ;;  %v80_v10 = vmul.f32 %v261_v23, %v73_v35  ;;  %v82_v14 = vmul.f32 %v262_v31, %v76_v41 }
  0x16   :  { %v90_v57 = vadd.f32 %v89_v47, %v88_v52  ;;  %v97_v60 = vsub.f32 %v95_v55, %v96_v51 }
  0x17   :  { %v102_v61 = vadd.f32 %v101_v56, %v100_v58  ;;  %v79_v9 = vsub.f32 %v77_v6, %v78_v7 }
  0x18   :  { %v105_v62 = vmul.f32 %v90_v57, %v90_v57  ;;  %v106_v63 = vmul.f32 %v97_v60, %v97_v60 }
  0x19   :  { %v104_v0 = vadd.f32 %v103_v59, %v102_v61  ;;  %v81_v13 = vsub.f32 %v79_v9, %v80_v10  ;;  %v326_v61 = vmov 0.7853982  }
  0x1a   :  { %v107_v1 = vadd.f32 %v106_v63, %v105_v62 }
  0x1b   :  { %v108_v3 = vmul.f32 %v104_v0, %v104_v0  ;;  %v83_v17 = vsub.f32 %v81_v13, %v82_v14 }
  0x1c   :  { %v195_v2 = vld [vmem:[#allocation2] sm:$0x1] }
  0x1d   :  { %v197_v4 = vsel %vm196_vm3, %v195_v2, 0.0  ;;  %v109_v5 = vadd.f32 %v108_v3, %v107_v1  ;;  %v122_v25 = vand.u32 2147483647, %v83_v17 }
  0x1e   :  { %198 = vadd.xlane.f32.xlu0 %v197_v4 }
  0x1f   :  { %276 = vrsqrt.f32 %v109_v5  ;;  %vm117_vm4 = vcmp.eq.f32.partialorder %v109_v5, inf  ;;  %v120_v21 = vand.u32 2147483648, %v109_v5  ;;  %vm119_vm5 = vcmp.eq.f32.partialorder %v109_v5, 0.0 }
  0x20   :  { %vm174_vm10 = vcmp.eq.s32.totalorder %v122_v25, inf  ;;  %vm168_vm14 = vcmp.ne.f32.partialorder %v122_v25, %v122_v25  ;;  %vm163_vm0 = vcmp.lt.f32.partialorder %v122_v25, 0.0 }
  0x21   :  { %v173_v62 = vsel %vm163_vm0, 2.3561945, %v326_v61 }
  0x25   :  { %v277_v8 = vpop.eup %276 }
  0x26   :  { %v111_v11 = vmul.f32 %v277_v8, %v109_v5 }
  0x28   :  { %v112_v12 = vmul.f32 %v277_v8, %v111_v11 }
  0x2a   :  { %v113_v15 = vmul.f32 0.5, %v112_v12 }
  0x2c   :  { %v114_v16 = vsub.f32 1.5, %v113_v15 }
  0x2e   :  { %v115_v20 = vmul.f32 %v277_v8, %v114_v16 }
  0x30   :  { %v116_v22 = vmul.f32 %v115_v20, %v109_v5 }
  0x32   :  { %v118_v24 = vsel %vm117_vm4, %v109_v5, %v116_v22  ;;  %v185_v5 = vld [vmem:[#allocation3] sm:$0x1] }
  0x33   :  { %v121_v26 = vsel %vm119_vm5, %v120_v21, %v118_v24 }
  0x34   :  { %v124_v18 = vand.u32 2147483647, %v121_v26  ;;  %vm169_vm15 = vcmp.ne.f32.partialorder %v121_v26, %v121_v26  ;;  %vm166_vm1 = vcmp.eq.f32.partialorder %v121_v26, 0.0  ;;  %v179_v1 = vand.u32 2147483648, %v121_v26 }
  0x35   :  { %vm170_vm2 = vmor %vm168_vm14, %vm169_vm15 }
  0x36   :  { %v126_v19 = vmax.f32 %v122_v25, %v124_v18  ;;  %v125_v33 = vmin.f32 %v122_v25, %v124_v18  ;;  %vm175_vm11 = vcmp.eq.s32.totalorder %v124_v18, inf  ;;  %vm160_vm13 = vcmp.gt.f32.partialorder %v124_v18, %v122_v25 }
  0x37   :  { %vm401_vm12 = vmand %vm174_vm10, %vm175_vm11  ;;  %v192_v18 = vstv %s191_s1 }
  0x38   :  { %278 = vrcp.f32 %v126_v19  ;;  %v138_v28 = vand.u32 2147483648, %v126_v19  ;;  %vm132_vm6 = vweird.f32 %v126_v19  ;;  %v136_v30 = vand.u32 2147483647, %v126_v19 }
  0x3a   :  { %v139_v32 = vor.u32 1.1754944e-38, %v138_v28  ;;  %vm137_vm9 = vcmp.eq.f32.partialorder %v136_v30, 8.507059e+37 }
  0x3e   :  { %v279_v27 = vpop.eup %278 }
  0x3f   :  { %v128_v23 = vmul.f32 %v279_v27, %v126_v19  ;;  %vm133_vm7 = vweird.f32 %v279_v27  ;;  %v222_v19 = vsub.f32 0.0, %v192_v18 }
  0x40   :  { %vm134_vm8 = vmor %vm132_vm6, %vm133_vm7 }
  0x41   :  { %v129_v29 = vsub.f32 1.0, %v128_v23  ;;  %v223_v23 = vmul.f32 1.442695, %v222_v19 }
  0x43   :  { %v130_v31 = vmul.f32 %v279_v27, %v129_v29  ;;  %280 = vpow2.f32 %v223_v23 }
  0x45   :  { %v131_v34 = vadd.f32 %v279_v27, %v130_v31 }
  0x47   :  { %v135_v35 = vsel %vm134_vm8, %v279_v27, %v131_v34  ;;  %v194_v27 = vstv %s267_s12 }
  0x48   :  { %v140_v36 = vsel %vm137_vm9, %v139_v32, %v135_v35  ;;  %v227_v28 = vsub.f32 0.0, %v194_v27 }
  0x49   :  { %v141_v37 = vmul.f32 %v140_v36, %v125_v33  ;;  %v281_v32 = vpop.eup %280 }
  0x4a   :  { %v228_v29 = vmul.f32 1.442695, %v227_v28 }
  0x4b   :  { %v142_v38 = vmul.f32 %v141_v37, %v141_v37 }
  0x4c   :  { %282 = vpow2.f32 %v228_v29 }
  0x4d   :  { %v143_v39 = vmul.f32 0.002785687, %v142_v38 }
  0x4f   :  { %v144_v40 = vadd.f32 -0.015866, %v143_v39 }
  0x51   :  { %v145_v41 = vmul.f32 %v144_v40, %v142_v38 }
  0x52   :  { %v283_v34 = vpop.eup %282 }
  0x53   :  { %v146_v42 = vadd.f32 0.04247222, %v145_v41 }
  0x55   :  { %v147_v43 = vmul.f32 %v146_v42, %v142_v38 }
  0x57   :  { %v148_v45 = vadd.f32 -0.074975304, %v147_v43 }
  0x59   :  { %v149_v46 = vmul.f32 %v148_v45, %v142_v38 }
  0x5b   :  { %v150_v47 = vadd.f32 0.1064488, %v149_v46 }
  0x5d   :  { %v151_v48 = vmul.f32 %v150_v47, %v142_v38 }
  0x5f   :  { %v152_v49 = vadd.f32 -0.14207031, %v151_v48 }
  0x61   :  { %v153_v50 = vmul.f32 %v152_v49, %v142_v38 }
  0x63   :  { %v154_v51 = vadd.f32 0.19993454, %v153_v50 }
  0x65   :  { %v155_v52 = vmul.f32 %v154_v51, %v142_v38 }
  0x67   :  { %v156_v53 = vadd.f32 -0.33333147, %v155_v52 }
  0x69   :  { %v157_v54 = vmul.f32 %v156_v53, %v142_v38 }
  0x6b   :  { %v158_v55 = vmul.f32 %v157_v54, %v141_v37 }
  0x6d   :  { %v159_v56 = vadd.f32 %v158_v55, %v141_v37 }
  0x6f   :  { %v161_v57 = vsub.f32 1.5707964, %v159_v56 }
  0x71   :  { %v162_v58 = vsel %vm160_vm13, %v161_v57, %v159_v56 }
  0x72   :  { %v164_v59 = vsub.f32 3.1415927, %v162_v58 }
  0x74   :  { %v165_v60 = vsel %vm163_vm0, %v164_v59, %v162_v58 }
  0x75   :  { %v167_v63 = vsel %vm166_vm1, 0.0, %v165_v60 }
  0x76   :  { %v171_v0 = vsel %vm170_vm2, nan, %v167_v63 }
  0x77   :  { %v177_v2 = vsel %vm401_vm12, %v173_v62, %v171_v0 }
  0x78   :  { %v178_v3 = vand.u32 2147483647, %v177_v2 }
  0x7a   :  { %v180_v4 = vor.u32 %v179_v1, %v178_v3 }
  0x7c   :  { %v181_v6 = vmul.f32 2.0, %v180_v4 }
  0x7e   :  { %v186_v7 = vadd.f32 %v185_v5, %v181_v6 }
  0x80   :  { %187 = vst [vmem:[#allocation3] sm:$0x1] %v186_v7 }
  0x87   :  { %v209_v8 = vld [vmem:[#allocation3] sm:$0x1] }
  0x88   :  { %v210_v9 = vsel %vm196_vm3, %v209_v8, 0.0  ;;  %vm233_vm3 = vcmask 0  }
  0x89   :  { %211 = vadd.xlane.f32.xlu0 %v210_v9 }
  0x91   :  { %v199_v10 = vpop.xlane.xlu0 %198 }
  0x92   :  { %v200_v11 = vrot.slane %v199_v10, 4 }
  0x94   :  { %v201_v12 = vadd.f32 %v200_v11, %v199_v10 }
  0x96   :  { %v202_v13 = vrot.slane %v201_v12, 2 }
  0x98   :  { %v203_v14 = vadd.f32 %v202_v13, %v201_v12 }
  0x9a   :  { %v204_v15 = vrot.slane %v203_v14, 1 }
  0x9c   :  { %v205_v16 = vadd.f32 %v204_v15, %v203_v14 }
  0x9e   :  { %268 = vpush %v205_v16 }
  0xcf   :  { %s269_s13 = spop %268 }
  0xd0   :  { %v207_v30 = vstv %s269_s13 }
  0xd1   :  { %v208_v31 = vmul.f32 0.125, %v207_v30 }
  0xd3   :  { %v225_v33 = vmul.f32 %v281_v32, %v208_v31 }
  0xd5   :  { %v226_v37 = vadd.f32 %v225_v33, %v192_v18 }
  0xfc   :  { %v212_v17 = vpop.xlane.xlu0 %211 }
  0xfd   :  { %v213_v20 = vrot.slane %v212_v17, 4 }
  0xff   :  { %v214_v21 = vadd.f32 %v213_v20, %v212_v17 }
 0x101   :  { %v215_v22 = vrot.slane %v214_v21, 2 }
 0x103   :  { %v216_v24 = vadd.f32 %v215_v22, %v214_v21 }
 0x105   :  { %v217_v25 = vrot.slane %v216_v24, 1 }
 0x107   :  { %v218_v26 = vadd.f32 %v217_v25, %v216_v24 }
 0x109   :  { %270 = vpush %v218_v26 }
 0x13a   :  { %s271_s14 = spop %270 }
 0x13b   :  { %v220_v35 = vstv %s271_s14 }
 0x13c   :  { %v221_v36 = vmul.f32 0.125, %v220_v35 }
 0x13e   :  { %v230_v38 = vmul.f32 %v283_v34, %v221_v36 }
 0x140   :  { %v231_v39 = vadd.f32 %v230_v38, %v226_v37 }
 0x142   :  { %v232_v40 = vadd.f32 %v231_v39, %v194_v27 }
 0x144   :  { %234 = vst.msk [vmem:[#allocation6] sm:$0x1] %vm233_vm3, %v232_v40 }
 0x145   :  { %245 = dma.vmem_to_hbm [thread:$0]  %s241_s16, 16, %s243_s0, [#allocation7]  }
 0x146   :  { %322 = dma.done.wait [#allocation7], 16  }
 0x147   :  { %323 = vsyncadd [#allocation7], 4294967280 }
 0x148   :  { %250 = vsyncpa [#allocation7], 1 }

</bundles_post_ra>
